<compile_context>
chip_gen: v5e
topology: v5e:2x2
jax: 0.10.0
libtpu: 0.0.40
codegen_flags: <defaults>
</compile_context>

<pallas_src>
import functools

import jax
import jax.numpy as jnp
from jax.experimental import pallas as pl
from jax.experimental.pallas import tpu as pltpu


def _round_up(x, m):
    return ((x + m - 1) // m) * m


def gcn_kernel(seq_ref, adj_ref, w_ref, b_ref, alpha_ref, out_ref, fts_ref):
    # seq_ref:   (N_pad, F_in)       bf16   (batch dim squeezed)
    # adj_ref:   (TM, N_pad)         bf16   current row tile of adjacency
    # w_ref:     (F_in, F_out_pad)   bf16   pre-transposed, zero-padded weight
    # b_ref:     (1, F_out_pad)      f32
    # alpha_ref: (1, 1)              f32    SMEM (PReLU slope)
    # out_ref:   (TM, F_out_pad)     f32
    # fts_ref:   (N_pad, F_out_pad)  bf16   VMEM scratch, per-batch node features

    # Compute seq_fts = seq @ W once per batch element (row-tile index 0),
    # then reuse the resident scratch for every row tile of this batch element.
    @pl.when(pl.program_id(1) == 0)
    def _():
        fts = jnp.dot(seq_ref[...], w_ref[...],
                      preferred_element_type=jnp.float32)
        fts_ref[...] = fts.astype(fts_ref.dtype)

    # Graph propagation for this row tile: (TM, N_pad) @ (N_pad, F_out_pad).
    out = jnp.dot(adj_ref[...], fts_ref[...],
                  preferred_element_type=jnp.float32)

    # Bias + PReLU in f32.
    out = out + b_ref[...]
    alpha = alpha_ref[0, 0]
    out_ref[...] = jnp.where(out > 0, out, alpha * out).astype(out_ref.dtype)


@functools.partial(jax.jit, static_argnames=())
def gcn_forward(seq, adj, weight, bias, alpha):
    """seq: (B, N, F_in), adj: (B, N, N), weight: (F_out, F_in) [PyTorch layout],
    bias: (F_out,), alpha: scalar PReLU slope. Returns (B, N, F_out) f32."""
    compute_dtype = jnp.bfloat16

    B, N, F_in = seq.shape
    F_out = weight.shape[0]

    # Row-tile size: whole (padded) graph if small, else 256-row tiles.
    # TM must be a multiple of 8 (sublane); the padded N a multiple of TM.
    if N <= 512:
        TM = _round_up(N, 8)
    else:
        TM = 256
    N_pad = _round_up(N, TM)
    F_out_pad = _round_up(F_out, 128)  # lane-dense output stores

    # --- layout plumbing done once, outside the kernel ---------------------
    seq_p = jnp.zeros((B, N_pad, F_in), compute_dtype)
    seq_p = seq_p.at[:, :N, :].set(seq.astype(compute_dtype))
    adj_p = jnp.zeros((B, N_pad, N_pad), compute_dtype)
    adj_p = adj_p.at[:, :N, :N].set(adj.astype(compute_dtype))
    # Pre-transposed weight: (F_in, F_out_pad); padded output columns are zero.
    w_p = jnp.zeros((F_in, F_out_pad), compute_dtype)
    w_p = w_p.at[:, :F_out].set(weight.T.astype(compute_dtype))
    b_p = jnp.zeros((1, F_out_pad), jnp.float32)
    b_p = b_p.at[0, :F_out].set(bias.astype(jnp.float32))
    alpha2d = jnp.asarray(alpha, jnp.float32).reshape(1, 1)

    grid = (B, N_pad // TM)

    # Advisory cost model for XLA's scheduler.
    itemsize = jnp.dtype(compute_dtype).itemsize
    flops = 2 * B * N_pad * F_out_pad * (F_in + N_pad)
    bytes_accessed = (B * N_pad * F_in * itemsize          # seq
                      + B * N_pad * N_pad * itemsize       # adj
                      + F_in * F_out_pad * itemsize        # weight
                      + B * N_pad * F_out_pad * 4)         # output
    cost = pl.CostEstimate(flops=int(flops), transcendentals=0,
                           bytes_accessed=int(bytes_accessed))

    # Rough VMEM footprint (double-buffered inputs/outputs + scratch); raise the
    # scoped limit if needed, but stay well under v7x's 64 MiB physical VMEM.
    vmem_need = (2 * N_pad * F_in * itemsize
                 + 2 * TM * N_pad * itemsize
                 + 2 * F_in * F_out_pad * itemsize
                 + 2 * F_out_pad * 4
                 + 2 * TM * F_out_pad * 4
                 + N_pad * F_out_pad * itemsize)
    vmem_limit = int(min(max(2 * vmem_need, 32 * 1024 * 1024),
                         48 * 1024 * 1024))

    out_p = pl.pallas_call(
        gcn_kernel,
        out_shape=jax.ShapeDtypeStruct((B, N_pad, F_out_pad), jnp.float32),
        grid_spec=pltpu.PrefetchScalarGridSpec(
            num_scalar_prefetch=0,
            grid=grid,
            in_specs=[
                # Full (padded) node features for this batch element.
                pl.BlockSpec((None, N_pad, F_in), lambda b, r: (b, 0, 0)),
                # Row tile of the adjacency.
                pl.BlockSpec((None, TM, N_pad), lambda b, r: (b, r, 0)),
                # Constant operands.
                pl.BlockSpec((F_in, F_out_pad), lambda b, r: (0, 0)),
                pl.BlockSpec((1, F_out_pad), lambda b, r: (0, 0)),
                pl.BlockSpec(memory_space=pltpu.SMEM),
            ],
            out_specs=pl.BlockSpec((None, TM, F_out_pad),
                                   lambda b, r: (b, r, 0)),
            scratch_shapes=[pltpu.VMEM((N_pad, F_out_pad), compute_dtype)],
        ),
        compiler_params=pltpu.CompilerParams(
            dimension_semantics=("parallel", "arbitrary"),
            vmem_limit_bytes=vmem_limit,
        ),
        cost_estimate=cost,
    )(seq_p, adj_p, w_p, b_p, alpha2d)

    return out_p[:, :N, :F_out]


def gcn_reference(seq, adj, weight, bias, alpha):
    seq_fts = jnp.einsum("bnf,of->bno", seq, weight)
    out = jnp.einsum("bnm,bmo->bno", adj, seq_fts)
    out = out + bias
    return jnp.where(out > 0, out, alpha * out)


if __name__ == "__main__":
    key = jax.random.PRNGKey(0)
    B, N, in_ft, out_ft = 2, 16, 32, 32

    k_seq, k_adj, k_w = jax.random.split(key, 3)
    seq = jax.random.normal(k_seq, (B, N, in_ft), dtype=jnp.float32)
    # Row-normalized dense "adjacency", as GCN typically expects.
    adj_raw = jax.random.uniform(k_adj, (B, N, N), dtype=jnp.float32)
    adj = adj_raw / jnp.sum(adj_raw, axis=-1, keepdims=True)

    # Parameters: xavier_uniform Linear weight, bias = 0, PReLU alpha = 0.25.
    limit = (6.0 / (in_ft + out_ft)) ** 0.5
    weight = jax.random.uniform(
        k_w, (out_ft, in_ft), minval=-limit, maxval=limit, dtype=jnp.float32)
    bias = jnp.zeros((out_ft,), dtype=jnp.float32)
    alpha = 0.25  # PyTorch nn.PReLU default init

    out = gcn_forward(seq, adj, weight, bias, alpha)
    jax.block_until_ready(out)

    ref = gcn_reference(seq, adj, weight, bias, alpha)
    assert out.shape == (B, N, out_ft)
    # bf16 MXU inputs (f32 accumulation) -> loosened tolerance vs f32 reference.
    assert jnp.allclose(out, ref, atol=2e-2, rtol=2e-2), (
        float(jnp.max(jnp.abs(out - ref))))

    print("KERNEL_OK")
</pallas_src>

<mosaic_0001>
module attributes {stable_mosaic.version = 11 : i64} {
  func.func @gcn_kernel(%arg0: i32, %arg1: i32, %arg2: memref<1x16x32xbf16, #tpu.memory_space<vmem>>, %arg3: memref<1x16x16xbf16, #tpu.memory_space<vmem>>, %arg4: memref<32x128xbf16, #tpu.memory_space<vmem>>, %arg5: memref<1x128xf32, #tpu.memory_space<vmem>>, %arg6: memref<1x1xf32, #tpu.memory_space<smem>>, %arg7: memref<1x16x128xf32, #tpu.memory_space<vmem>>, %arg8: memref<16x128xbf16, #tpu.memory_space<vmem>>) attributes {dimension_semantics = [#tpu.dimension_semantics<parallel>, #tpu.dimension_semantics<arbitrary>], iteration_bounds = array<i64: 2, 1>, scalar_prefetch = 0 : i64, scratch_operands = 1 : i64, tpu.core_type = #tpu.core_type<tc>, window_params = [{transform_indices = @transform_0, window_bounds = array<i64: 1, 16, 32>}, {transform_indices = @transform_1, window_bounds = array<i64: 1, 16, 16>}, {pipeline_mode = #tpu.pipeline_mode<synchronous>, transform_indices = @transform_2, window_bounds = array<i64: 32, 128>}, {pipeline_mode = #tpu.pipeline_mode<synchronous>, transform_indices = @transform_3, window_bounds = array<i64: 1, 128>}, {transform_indices = @transform_4, window_bounds = array<i64: 1, 1>}, {transform_indices = @transform_5, window_bounds = array<i64: 1, 16, 128>}]} {
    %c0_i32 = arith.constant 0 : i32
    %0 = arith.cmpi eq, %arg1, %c0_i32 : i32
    %1 = arith.extui %0 : i1 to i32
    %c0_i32_0 = arith.constant 0 : i32
    %2 = arith.cmpi ne, %1, %c0_i32_0 : i32
    scf.if %2 {
      %c0_13 = arith.constant 0 : index
      %c0_14 = arith.constant 0 : index
      %c0_15 = arith.constant 0 : index
      %19 = vector.load %arg2[%c0_13, %c0_14, %c0_15] : memref<1x16x32xbf16, #tpu.memory_space<vmem>>, vector<1x16x32xbf16>
      %20 = vector.shape_cast %19 : vector<1x16x32xbf16> to vector<16x32xbf16>
      %c0_16 = arith.constant 0 : index
      %c0_17 = arith.constant 0 : index
      %21 = vector.load %arg4[%c0_16, %c0_17] : memref<32x128xbf16, #tpu.memory_space<vmem>>, vector<32x128xbf16>
      %cst_18 = arith.constant dense<0.000000e+00> : vector<16x128xf32>
      %22 = tpu.matmul %20, %21, %cst_18 {dimension_numbers = #tpu.dot_dimension_numbers<[1], [0], [0], [1], [0, 0, 1, 1], [], []>} : vector<16x32xbf16>, vector<32x128xbf16>, vector<16x128xf32> -> vector<16x128xf32>
      %23 = arith.truncf %22 : vector<16x128xf32> to vector<16x128xbf16>
      %c0_19 = arith.constant 0 : index
      %c0_20 = arith.constant 0 : index
      %24 = vector.load %arg8[%c0_19, %c0_20] : memref<16x128xbf16, #tpu.memory_space<vmem>>, vector<16x128xbf16>
      tpu.vector_store %arg8[%c0_19, %c0_20], %23 {strides = array<i32>} : memref<16x128xbf16, #tpu.memory_space<vmem>>, vector<16x128xbf16>,
    } else {
    }
    %c0 = arith.constant 0 : index
    %c0_1 = arith.constant 0 : index
    %c0_2 = arith.constant 0 : index
    %3 = vector.load %arg3[%c0, %c0_1, %c0_2] : memref<1x16x16xbf16, #tpu.memory_space<vmem>>, vector<1x16x16xbf16>
    %4 = vector.shape_cast %3 : vector<1x16x16xbf16> to vector<16x16xbf16>
    %c0_3 = arith.constant 0 : index
    %c0_4 = arith.constant 0 : index
    %5 = vector.load %arg8[%c0_3, %c0_4] : memref<16x128xbf16, #tpu.memory_space<vmem>>, vector<16x128xbf16>
    %cst = arith.constant dense<0.000000e+00> : vector<16x128xf32>
    %6 = tpu.matmul %4, %5, %cst {dimension_numbers = #tpu.dot_dimension_numbers<[1], [0], [0], [1], [0, 0, 1, 1], [], []>} : vector<16x16xbf16>, vector<16x128xbf16>, vector<16x128xf32> -> vector<16x128xf32>
    %c0_5 = arith.constant 0 : index
    %c0_6 = arith.constant 0 : index
    %7 = vector.load %arg5[%c0_5, %c0_6] : memref<1x128xf32, #tpu.memory_space<vmem>>, vector<1x128xf32>
    %8 = vector.broadcast %7 : vector<1x128xf32> to vector<16x128xf32>
    %9 = arith.addf %6, %8 : vector<16x128xf32>
    %c0_7 = arith.constant 0 : index
    %c0_8 = arith.constant 0 : index
    %10 = memref.load %arg6[%c0_7, %c0_8] : memref<1x1xf32, #tpu.memory_space<smem>>
    %cst_9 = arith.constant 0.000000e+00 : f32
    %11 = vector.broadcast %cst_9 : f32 to vector<16x128xf32>
    %12 = arith.cmpf ogt, %9, %11 : vector<16x128xf32>
    %13 = vector.broadcast %10 : f32 to vector<16x128xf32>
    %14 = arith.mulf %13, %9 : vector<16x128xf32>
    %15 = arith.select %12, %9, %14 : vector<16x128xi1>, vector<16x128xf32>
    %c0_10 = arith.constant 0 : index
    %c0_11 = arith.constant 0 : index
    %c0_12 = arith.constant 0 : index
    %16 = vector.load %arg7[%c0_10, %c0_11, %c0_12] : memref<1x16x128xf32, #tpu.memory_space<vmem>>, vector<1x16x128xf32>
    %17 = vector.shape_cast %16 : vector<1x16x128xf32> to vector<16x128xf32>
    %18 = vector.shape_cast %15 : vector<16x128xf32> to vector<1x16x128xf32>
    tpu.vector_store %arg7[%c0_10, %c0_11, %c0_12], %18 {strides = array<i32>} : memref<1x16x128xf32, #tpu.memory_space<vmem>>, vector<1x16x128xf32>,
    return
  }
  func.func @transform_0(%arg0: i32, %arg1: i32) -> (i32, i32, i32) {
    %c0_i32 = arith.constant 0 : i32
    %c0_i32_0 = arith.constant 0 : i32
    %c0_i32_1 = arith.constant 0 : i32
    return %arg0, %c0_i32, %c0_i32_0 : i32, i32, i32
  }
  func.func @transform_1(%arg0: i32, %arg1: i32) -> (i32, i32, i32) {
    %c0_i32 = arith.constant 0 : i32
    %c0_i32_0 = arith.constant 0 : i32
    return %arg0, %arg1, %c0_i32 : i32, i32, i32
  }
  func.func @transform_2(%arg0: i32, %arg1: i32) -> (i32, i32) {
    %c0_i32 = arith.constant 0 : i32
    %c0_i32_0 = arith.constant 0 : i32
    %c0_i32_1 = arith.constant 0 : i32
    return %c0_i32, %c0_i32_0 : i32, i32
  }
  func.func @transform_3(%arg0: i32, %arg1: i32) -> (i32, i32) {
    %c0_i32 = arith.constant 0 : i32
    %c0_i32_0 = arith.constant 0 : i32
    %c0_i32_1 = arith.constant 0 : i32
    return %c0_i32, %c0_i32_0 : i32, i32
  }
  func.func @transform_4(%arg0: i32, %arg1: i32) -> (i32, i32) {
    %c0_i32 = arith.constant 0 : i32
    %c0_i32_0 = arith.constant 0 : i32
    %c0_i32_1 = arith.constant 0 : i32
    return %c0_i32, %c0_i32_0 : i32, i32
  }
  func.func @transform_5(%arg0: i32, %arg1: i32) -> (i32, i32, i32) {
    %c0_i32 = arith.constant 0 : i32
    %c0_i32_0 = arith.constant 0 : i32
    return %arg0, %arg1, %c0_i32 : i32, i32, i32
  }
}

</mosaic_0001>

<bundles_post_ra>
// kernel: gcn_forward.1
= control target key start
LH: loop header
LB: loop body
LE: loop exit
PB: predicated region body
PF: predicated region fallthrough
CT: control target
= control target key end

     0   :  { %s813_s0 = inlined_call_operand.vmem [shape: bf16[2,16,32], index: 0, kind: input, shape index: {}]   ;;  %s814_s1 = inlined_call_operand.vmem [shape: bf16[2,16,16], index: 1, kind: input, shape index: {}]   ;;  %s815_s2 = inlined_call_operand.vmem [shape: bf16[32,128], index: 2, kind: input, shape index: {}]   ;;  %s816_s3 = inlined_call_operand.vmem [shape: f32[1,128], index: 3, kind: input, shape index: {}]   ;;  %s817_s4 = inlined_call_operand.<no memory space> [shape: f32[1,1], index: 4, kind: input, shape index: {}]   ;;  %s818_s5 = inlined_call_operand.hbm [shape: f32[2,16,128], index: 5, kind: output, shape index: {}]  }
   0x1   :  { %10 = sst [smem:[#allocation3]] %s817_s4 }
   0x2   :  { %11 = vsyncpa [#allocation5], 0 }
   0x3   :  { %13 = vsyncpa [#allocation5 + $0x1], 0  ;;  %s704_s20 = smov 0   ;;  %s706_s21 = smov 0  }
   0x4   :  { %s708_s22 = smov 0   ;;  %s710_s23 = smov 0  }
   0x5   :  { %s712_s24 = smov 0   ;;  %s714_s25 = smov 0  }
   0x6 LB: > { %s481_s4 = sadd.s32 4294967295, %s667_s25   ;;  %s482_s26 = sadd.s32 4294967294, %s667_s25   ;;  %s667_s25 = sphi %s714_s25, %s19_s25   ;;  %s663_s24 = sphi %s712_s24, %s825_s24   ;;  %s659_s23 = sphi %s710_s23, %s824_s23   ;;  %s655_s22 = sphi %s708_s22, %s823_s22   ;;  %s651_s21 = sphi %s706_s21, %s822_s21   ;;  %s647_s20 = sphi %s704_s20, %s821_s20  }
   0x7   : > { %s31_s27 = sadd.s32 1, %s663_s24  ;;  %s157_s28 = sadd.s32 1, %s655_s22 }
   0x8   : > { %p33_p0 = scmp.ge.s32.totalorder %s31_s27, 2  ;;  %p167_p1 = scmp.ne.s32.totalorder %s655_s22, %s651_s21 }
   0x9   : > { %p168_p2 = scmp.eq.s32.totalorder %s481_s4, 1  ;;  %p173_p3 = scmp.ne.s32.totalorder %s651_s21, %s647_s20 }
   0xa   : > { %s827_s27 = smov (%p33_p0, %s31_s27), 0  ;;  %p174_p5 = scmp.eq.s32.totalorder %s482_s26, 1 }
   0xb   : > { %p744_p4 = por %p168_p2, %p167_p1  ;;  %s152_s30 = ssub.s32 %s663_s24, %s827_s27 }
   0xc   : > { %p485_p6 = scmp.ge.s32.totalorder %s667_s25, 1  ;;  %p155_p7 = scmp.eq.s32.totalorder %s152_s30, 0 }
   0xd   : > { %p751_p8 = por %p174_p5, %p173_p3  ;;  %p222_p9 = scmp.lt.s32.totalorder %s667_s25, 3 }
   0xe   : > { %s757_s7 = scalar_select %p155_p7, %s655_s22, %s157_s28  }
   0xf   : > { %p223_p10 = pnand %p485_p6, %p222_p9 }
  0x10   : > { %p259_p11 = scmp.lt.s32.totalorder (!%p223_p10), %s659_s23, 1  ;;  %s362_s4 = sld [smem:[#allocation3]] (!%p223_p10) }
  0x11   : > { %226 = sbr.rel (%p223_p10) target bundleno = 320 (0x140), region = 40  ;;  %s256_s26 = sand.u32 (!%p223_p10), 1, %s651_s21  }
  0x12   : > { %s486_s8 = sshll.u32 (!%p223_p10), %s256_s26, 4  ;;  %s525_s9 = sshll.u32 (!%p223_p10), %s659_s23, 4 }
  0x16   : > { %v522_v0 = vld [vmem:[%s815_s2 + $0x8] sm:$0xff]  ;;  %v521_v1 = vld [vmem:[%s815_s2] sm:$0xff]  ;;  %s260_s12 = scalar_select %p259_p11, %s659_s23, 1  ;;  %vm303_vm0 = vcmask 261120   ;;  %vm344_vm1 = vcmask 130048   ;;  %v365_v10 = vstv %s362_s4 }
  0x17   : > { %313 = vmatpush.bf16.msra.mxu0 %v522_v0  ;;  %v588_v8 = vld [vmem:[%s816_s3] ss:$0 sm:$0xff]  ;;  %s373_s23 = scalar_lea.sflag [#allocation5], %s256_s26  ;;  %s609_s4 = scalar_lea.hbm %s818_s5, 32 }
  0x18   : > { %s518_s13 = sshll.u32 %s260_s12, 3  ;;  %s386_s12 = scalar_lea.hbm %s818_s5, %s525_s9 }
  0x19   : > { %s263_s16 = scalar_lea.vmem %s813_s0, %s518_s13  ;;  %s272_s19 = scalar_lea.vmem %s814_s1, %s518_s13 }
  0x1a   : > { %v520_v2 = vld [vmem:[%s263_s16] sm:$0xff]  ;;  %s258_s13 = scalar_lea.vmem [#allocation4], %s486_s8  ;;  %s389_s15 = sshll.u32 %s386_s12, 4  ;;  %s390_s15 = int_to_ptr.hbm [resolvable:$true] %s389_s15 }
  0x1b   : > { %314 = vmatpush.bf16.msra.mxu0 %v521_v1  ;;  %v523_v7 = vld [vmem:[%s272_s19] sm:$0xff]  ;;  %s387_s14 = sshll.u32 %s258_s13, 4  ;;  %s603_s16 = sshra.s32 %s390_s15, 4  ;;  %s388_s14 = int_to_ptr.vmem [resolvable:$true] %s387_s14  ;;  %s604_s16 = int_to_ptr.hbm [resolvable:$true] %s603_s16 }
  0x1c   : > { %s605_s17 = scalar_lea.hbm %s604_s16, 16  ;;  %p610_p1 = scmp.lt.s32.totalorder %s604_s16, %s818_s5 }
  0x1d   : > { %p606_p12 = scmp.ne.s32.totalorder %s604_s16, %s605_s17  ;;  %p611_p2 = scmp.lt.s32.totalorder %s609_s4, %s605_s17 }
  0x1e   : > { %503 = vmatmul.msk.bf16.vlgmr.msra.gmra.mxu0 %vm303_vm0, %v520_v2 }
  0x1f   : > { %p607_p13 = pnand %p606_p12, %p744_p4  ;;  %p612_p3 = por %p611_p2, %p610_p1 }
  0x21   : > { %p608_p0 = pneg %p607_p13 }
  0x23   : > { %p613_p5 = pnand %p612_p3, %p608_p0 }
  0x9b   : > { %v316_v3 = vpop.f32.mrf.mxu0 }
  0xa3   : > { %v318_v4 = vpop.f32.mrf.mxu0 }
  0xa4   : > { %v529_v5 = vpack.c.bf16 %v318_v4, %v316_v3 }
  0xa6   : > { %530 = vst [vmem:[#allocation2] sm:$0xff] %v529_v5  }
  0xad   : > { %v524_v6 = vld [vmem:[#allocation2] sm:$0xff] }
  0xae   : > { %355 = vmatpush.bf16.msra.mxu1 %v524_v6 }
  0xb1   : > { %512 = vmatmul.msk.bf16.vlgmr.msra.gmra.mxu1 %vm344_vm1, %v523_v7 }
 0x12e   : > { %v357_v9 = vpop.f32.mrf.mxu1 }
 0x12f   : > { %v358_v11 = vadd.f32 %v588_v8, %v357_v9 }
 0x131   : > { %vm363_vm2 = vcmp.gt.f32.partialorder %v358_v11, 0.0  ;;  %v366_v12 = vmul.f32 %v365_v10, %v358_v11 }
 0x133   : > { %v368_v13 = vsel %vm363_vm2, %v358_v11, %v366_v12 }
 0x134   : > { %370 = vst [vmem:[%s258_s13] sm:$0xff] %v368_v13 }
 0x136   : > { %v359_v14 = vpop.f32.mrf.mxu1 }
 0x137   : > { %v360_v15 = vadd.f32 %v588_v8, %v359_v14 }
 0x139   : > { %vm364_vm3 = vcmp.gt.f32.partialorder %v360_v15, 0.0  ;;  %v367_v16 = vmul.f32 %v365_v10, %v360_v15 }
 0x13b   : > { %v369_v17 = vsel %vm364_vm3, %v360_v15, %v367_v16 }
 0x13c   : > { %371 = vst [vmem:[%s258_s13 + $0x8] sm:$0xff] %v369_v17 }
 0x13d   : > { %616 = shalt.err (!%p613_p5)
}
 0x13e   : > { %s669_s26 = smov 128   ;;  %s670_s8 = smov 8  }
 0x13f   : > { %531 = dma.vmem_to_hbm [thread:$0]  (%p744_p4), %s388_s14, 256, %s390_s15, %s373_s23, %s669_s26, %s669_s26, %s670_s8  }
 0x140 PF: > { %p537_p6 = scmp.ge.s32.totalorder %s667_s25, 2  ;;  %s404_s9 = sand.u32 1, %s647_s20  }
 0x141   : > { %s405_s10 = scalar_lea.sflag [#allocation5], %s404_s9 }
 0x142   : > { %p534_p7 = pnand %p537_p6, %p751_p8 }
 0x144   : > { %p535_p9 = pneg %p534_p7 }
 0x146   : > { %642 = dma.done.wait (%p535_p9), %s405_s10, 256  }
 0x147   : > { %644 = vsyncadd (%p535_p9), %s405_s10, 4294967040  ;;  %s19_s25 = sadd.s32 1, %s667_s25   ;;  %s821_s20 = smov %s651_s21 }
 0x148   : > { %p16_p10 = scmp.ge.s32.totalorder %s19_s25, 4   ;;  %s822_s21 = smov %s655_s22 }
 0x149   : > { %s823_s22 = smov %s757_s7  ;;  %s824_s23 = smov %s663_s24 }
 0x14a   : > { %s825_s24 = smov %s827_s27  ;;  %18 = sbr.rel (!%p16_p10) target bundleno = 6 (0x6), region = 82 }
 0x14f   :  { %411 = vsyncpa [#allocation5], 1 }
 0x150   :  { %413 = vsyncpa [#allocation5 + $0x1], 1 }

</bundles_post_ra>
